<compile_context>
chip_gen: v6e
topology: v6e:2x2x1
jax: 0.10.0
libtpu: 0.0.40
codegen_flags: <defaults>
</compile_context>

<pallas_src>
import jax
import jax.numpy as jnp
from jax.experimental import pallas as pl
from jax.experimental.pallas import tpu as pltpu

_LANE = 128
_TARGET_BLOCK_BYTES = 8 * 1024 * 1024       # ~8 MiB per block
_VMEM_LIMIT_BYTES = 48 * 1024 * 1024        # < v7x 64 MiB physical VMEM


def _identity_kernel(x_ref, o_ref):
    # Full-tile copy: load the VMEM block and store it unchanged.
    o_ref[...] = x_ref[...]


def _prod(shape):
    p = 1
    for s in shape:
        p *= int(s)
    return p


def _round_up(x, m):
    return ((x + m - 1) // m) * m


def _largest_lane_divisor(total, cap=4096):
    """Largest multiple-of-128 divisor of `total` that is <= cap, or None."""
    c = min(cap, (total // _LANE) * _LANE)
    while c >= _LANE:
        if total % c == 0:
            return c
        c -= _LANE
    return None


def _pallas_copy_2d(x2, rows, cols, dtype):
    dtype_bytes = jnp.dtype(dtype).itemsize
    # Sub-32-bit dtypes pack along sublanes (f32 -> 8, bf16 -> 16, int8 -> 32).
    sublane = max(8, 32 // dtype_bytes)

    if rows <= sublane:
        tile_r = rows                          # full-dim block is always legal
    else:
        row_bytes = cols * dtype_bytes
        tile_r = (_TARGET_BLOCK_BYTES // row_bytes) // sublane * sublane
        tile_r = max(sublane, min(tile_r, _round_up(rows, sublane)))
        # Give both v7x TensorCores work for this DMA-bound copy when the whole
        # slab would otherwise be a single grid step (cheap on 1-TC chips).
        if pl.cdiv(rows, tile_r) < 2 and rows >= 2 * sublane:
            tile_r = _round_up(pl.cdiv(rows, 2), sublane)

    grid = (pl.cdiv(rows, tile_r),)

    return pl.pallas_call(
        _identity_kernel,
        out_shape=jax.ShapeDtypeStruct((rows, cols), dtype),
        grid_spec=pltpu.PrefetchScalarGridSpec(
            num_scalar_prefetch=0,
            grid=grid,
            in_specs=[pl.BlockSpec((tile_r, cols), lambda i: (i, 0))],
            out_specs=pl.BlockSpec((tile_r, cols), lambda i: (i, 0)),
        ),
        compiler_params=pltpu.CompilerParams(
            dimension_semantics=("parallel",),
            vmem_limit_bytes=_VMEM_LIMIT_BYTES,
        ),
        cost_estimate=pl.CostEstimate(
            flops=0,
            transcendentals=0,
            bytes_accessed=2 * rows * cols * dtype_bytes,
        ),
    )(x2)


def operator_template_forward(x, template: str = "x", materialize: bool = False):
    """Pallas implementation of OperatorTemplate.forward for template='x'."""
    if template != "x":
        # TODO(synk): arbitrary eval'd templates are not statically translatable;
        # only the default identity template is implemented.
        raise NotImplementedError("Only template='x' (identity) is supported.")

    if not materialize:
        # Identity: the fastest copy is no copy.
        return x

    orig_shape = x.shape
    dtype = x.dtype
    total = _prod(orig_shape)
    if total == 0:
        return x

    dtype_bytes = jnp.dtype(dtype).itemsize

    cols = _largest_lane_divisor(total)
    if cols is not None:
        # Free, pad-less reshape to a lane-dense slab.
        rows = total // cols
        out = _pallas_copy_2d(x.reshape(rows, cols), rows, cols, dtype)
        return out.reshape(orig_shape)

    if 2 * total * dtype_bytes <= _TARGET_BLOCK_BYTES:
        # Small unaligned arrays: single full-array block (no padding needed;
        # block shape equals the array shape).
        out = _pallas_copy_2d(x.reshape(1, total), 1, total, dtype)
        return out.reshape(orig_shape)

    # Rare fallback: large element count with no multiple-of-128 divisor.
    # Pad to a lane-aligned slab, copy, slice back (correct but ~3x traffic).
    # TODO(synk): could be replaced by a chunked HBM->HBM make_async_copy path.
    cols = _LANE
    rows = pl.cdiv(total, cols)
    padded_total = rows * cols
    x_flat = jnp.pad(x.reshape(total), (0, padded_total - total))
    out = _pallas_copy_2d(x_flat.reshape(rows, cols), rows, cols, dtype)
    return out.reshape(padded_total)[:total].reshape(orig_shape)


if __name__ == "__main__":
    key = jax.random.PRNGKey(0)
    # Small NCHW input consistent with a typical conv-style module input.
    x = jax.random.normal(key, (2, 4, 16, 16), dtype=jnp.float32)

    # Default path: identity short-circuit (no kernel, no copy).
    y_fast = operator_template_forward(x)
    assert y_fast is x

    # Materializing path: runs the Pallas streaming-copy kernel on TPU.
    y = operator_template_forward(x, materialize=True)
    y = jax.block_until_ready(y)

    assert y.shape == x.shape and y.dtype == x.dtype
    assert bool(jnp.all(y == x))
    print("KERNEL_OK")
</pallas_src>

<mosaic_0001>
module attributes {stable_mosaic.version = 11 : i64} {
  func.func @_identity_kernel(%arg0: i32, %arg1: memref<1x2048xf32, #tpu.memory_space<vmem>>, %arg2: memref<1x2048xf32, #tpu.memory_space<vmem>>) attributes {dimension_semantics = [#tpu.dimension_semantics<parallel>], iteration_bounds = array<i64: 1>, scalar_prefetch = 0 : i64, scratch_operands = 0 : i64, tpu.core_type = #tpu.core_type<tc>, window_params = [{transform_indices = @transform_0, window_bounds = array<i64: 1, 2048>}, {transform_indices = @transform_1, window_bounds = array<i64: 1, 2048>}]} {
    %c0 = arith.constant 0 : index
    %c0_0 = arith.constant 0 : index
    %0 = vector.load %arg1[%c0, %c0_0] : memref<1x2048xf32, #tpu.memory_space<vmem>>, vector<1x2048xf32>
    %c0_1 = arith.constant 0 : index
    %c0_2 = arith.constant 0 : index
    %1 = vector.load %arg2[%c0_1, %c0_2] : memref<1x2048xf32, #tpu.memory_space<vmem>>, vector<1x2048xf32>
    tpu.vector_store %arg2[%c0_1, %c0_2], %0 {strides = array<i32>} : memref<1x2048xf32, #tpu.memory_space<vmem>>, vector<1x2048xf32>,
    return
  }
  func.func @transform_0(%arg0: i32) -> (i32, i32) {
    %c0_i32 = arith.constant 0 : i32
    %c0_i32_0 = arith.constant 0 : i32
    return %arg0, %c0_i32 : i32, i32
  }
  func.func @transform_1(%arg0: i32) -> (i32, i32) {
    %c0_i32 = arith.constant 0 : i32
    %c0_i32_0 = arith.constant 0 : i32
    return %arg0, %c0_i32 : i32, i32
  }
}

</mosaic_0001>

<bundles_post_ra>
// kernel: tpu_custom_call.1
= control target key start
LH: loop header
LB: loop body
LE: loop exit
PB: predicated region body
PF: predicated region fallthrough
CT: control target
= control target key end

     0   :  { %6 = vsyncpa [#allocation3], 0  ;;  %s104_s0 = inlined_call_operand.hbm [shape: f32[1,2048], index: 0, kind: input, shape index: {}]   ;;  %s105_s1 = inlined_call_operand.hbm [shape: f32[1,2048], index: 1, kind: output, shape index: {}]  }
   0x1   :  { %7 = vsyncpa [#allocation4], 0  ;;  %s86_s6 = smov [#allocation2]  }
   0x2   :  { %s14_s7 = sshll.u32 %s86_s6, 4  ;;  %s15_s7 = int_to_ptr.vmem [resolvable:$true] %s14_s7 }
   0x3   :  { %s50_s8 = scalar_lea.vmem %s15_s7, 256  ;;  %p55_p1 = scmp.lt.s32.totalorder %s15_s7, %s15_s7 }
   0x4   :  { %p51_p0 = scmp.ne.s32.totalorder %s15_s7, %s50_s8  ;;  %p56_p2 = scmp.lt.s32.totalorder %s50_s8, %s50_s8 }
   0x6   :  { %p57_p3 = por %p56_p2, %p55_p1 }
   0x8   :  { %p58_p4 = pnand %p57_p3, %p51_p0 }
   0xa   :  { %61 = shalt.err (!%p58_p4)
}
   0xb   :  { %17 = dma.hbm_to_vmem [thread:$0]  %s104_s0, 256, %s15_s7, [#allocation3]  }
   0xc   :  { %82 = dma.done.wait [#allocation3], 256  }
   0xd   :  { %83 = vsyncadd [#allocation3], 4294967040  ;;  %s87_s11 = smov [#allocation5]   ;;  %v21_v0 = vld [vmem:[#allocation2] sm:$0xff]  ;;  %v22_v1 = vld [vmem:[#allocation2 + $0x8] sm:$0xff] }
   0xe   :  { %s31_s12 = sshll.u32 %s87_s11, 4  ;;  %23 = vst [vmem:[#allocation5] sm:$0xff] %v21_v0  ;;  %24 = vst [vmem:[#allocation5 + $0x8] sm:$0xff] %v22_v1  ;;  %s32_s12 = int_to_ptr.vmem [resolvable:$true] %s31_s12 }
   0xf   :  { %s62_s13 = scalar_lea.vmem %s32_s12, 256  ;;  %p67_p6 = scmp.lt.s32.totalorder %s32_s12, %s32_s12 }
  0x10   :  { %p63_p5 = scmp.ne.s32.totalorder %s32_s12, %s62_s13  ;;  %p68_p7 = scmp.lt.s32.totalorder %s62_s13, %s62_s13 }
  0x12   :  { %p69_p8 = por %p68_p7, %p67_p6 }
  0x14   :  { %p70_p9 = pnand %p69_p8, %p63_p5 }
  0x16   :  { %73 = shalt.err (!%p70_p9)
}
  0x17   :  { %34 = dma.vmem_to_hbm [thread:$0]  %s32_s12, 256, %s105_s1, [#allocation4]  }
  0x18   :  { %84 = dma.done.wait [#allocation4], 256  }
  0x19   :  { %85 = vsyncadd [#allocation4], 4294967040 }
  0x1a   :  { %38 = vsyncpa [#allocation3], 1 }
  0x1b   :  { %39 = vsyncpa [#allocation4], 1 }

</bundles_post_ra>
